<compile_context>
chip_gen: v7x
topology: tpu7x:2x2x1
jax: 0.10.0
libtpu: 0.0.40
codegen_flags: <defaults>
</compile_context>

<pallas_src>
import functools
import math

import jax
import jax.numpy as jnp
from jax.experimental import pallas as pl
from jax.experimental.pallas import tpu as pltpu


VMEM_LIMIT_BYTES = 64 * 1024 * 1024  # fits v7x 64 MiB physical VMEM; well under v5e/v6e 128 MiB


def _pick_row_tile(m, target=512):
    """Largest divisor of m that is <= target and a multiple of 8 (or m itself)."""
    if m <= target:
        return m
    for t in range(target, 7, -1):
        if m % t == 0 and t % 8 == 0:
            return t
    return m


# ----------------------------- Pallas kernels ---------------------------------


def emb_layernorm_kernel(w_ref, t_ref, p_ref, g_ref, b_ref, o_ref, *, eps):
    # One batch element per grid step: word + token_type + position embeddings (position table is
    # resident via a constant index_map, so it is DMA'd once, not B times), then LayerNorm over H.
    # bf16 I/O, f32 elementwise math.
    x = (w_ref[...].astype(jnp.float32)
         + t_ref[...].astype(jnp.float32)
         + p_ref[...].astype(jnp.float32))                               # [S, H]
    mean = jnp.mean(x, axis=-1, keepdims=True)
    var = jnp.mean((x - mean) * (x - mean), axis=-1, keepdims=True)
    xn = (x - mean) * jax.lax.rsqrt(var + eps)
    o_ref[...] = (xn * g_ref[...] + b_ref[...]).astype(o_ref.dtype)


def attention_block_kernel(x_ref, wqkv_ref, bqkv_ref, wo_ref, bo_ref, mask_ref,
                           g_ref, b_ref, o_ref, *, num_heads, head_dim, scale, eps):
    # One batch element per grid step: fused QKV projection -> all-heads batched attention
    # -> output projection -> residual add -> LayerNorm, entirely in VMEM.
    x = x_ref[...]                                                       # [S, H] bf16
    s_len = x.shape[0]
    hidden = num_heads * head_dim

    # single [H, 3H] matmul for Q|K|V, f32 accumulation, bf16 result for the attention dots
    qkv = (jnp.dot(x, wqkv_ref[...], preferred_element_type=jnp.float32)
           + bqkv_ref[...]).astype(jnp.bfloat16)                         # [S, 3H]

    def split_heads(y):
        # (S, H) -> (S, NH, D) -> (NH, S, D); einshape handles the head-major relayout.
        return pltpu.einshape("snd->nsd", y.reshape(s_len, num_heads, head_dim))

    q = split_heads(qkv[:, :hidden])                                     # [NH, S, D]
    k = split_heads(qkv[:, hidden:2 * hidden])                           # [NH, S, D]
    v = split_heads(qkv[:, 2 * hidden:])                                 # [NH, S, D]

    m = mask_ref[...]                                                    # [1, S] additive key mask
    # all heads in one batched contraction (no per-head Python loop, no lane-axis concat)
    scores = jnp.einsum("nqd,nkd->nqk", q, k,
                        preferred_element_type=jnp.float32) * scale + m[None, :, :]
    smax = jnp.max(scores, axis=-1, keepdims=True)
    p = jnp.exp(scores - smax)
    denom = jnp.sum(p, axis=-1, keepdims=True)
    p = p * pl.reciprocal(denom, approx=True)                            # EUP reciprocal

    ctx = jnp.einsum("nqk,nkd->nqd", p.astype(jnp.bfloat16), v,
                     preferred_element_type=jnp.float32)                 # [NH, S, D]
    ctx = pltpu.einshape("nsd->snd", ctx.astype(jnp.bfloat16)).reshape(s_len, hidden)

    attn_out = (jnp.dot(ctx, wo_ref[...], preferred_element_type=jnp.float32)
                + bo_ref[...])                                           # [S, H] f32
    y = attn_out + x.astype(jnp.float32)                                 # residual
    mean = jnp.mean(y, axis=-1, keepdims=True)
    var = jnp.mean((y - mean) * (y - mean), axis=-1, keepdims=True)
    yn = (y - mean) * jax.lax.rsqrt(var + eps)
    o_ref[...] = (yn * g_ref[...] + b_ref[...]).astype(o_ref.dtype)


def ffn_block_kernel(x_ref, w1_ref, b1_ref, w2_ref, b2_ref, g_ref, b_ref, o_ref, *, eps):
    # Row-tiled fused feed-forward: matmul + GELU + matmul + residual add + LayerNorm.
    # Weights are resident (constant index_map); x/weights bf16, accumulation/elementwise f32.
    x = x_ref[...]                                                       # [tm, H] bf16
    h = jnp.dot(x, w1_ref[...], preferred_element_type=jnp.float32) + b1_ref[...]
    # TODO(synk): HF BERT default is exact erf-GELU; tanh approximation kept (EUP friendly).
    c = math.sqrt(2.0 / math.pi)
    h = 0.5 * h * (1.0 + jnp.tanh(c * (h + 0.044715 * h * h * h)))
    y = (jnp.dot(h.astype(jnp.bfloat16), w2_ref[...], preferred_element_type=jnp.float32)
         + b2_ref[...] + x.astype(jnp.float32))
    mean = jnp.mean(y, axis=-1, keepdims=True)
    var = jnp.mean((y - mean) * (y - mean), axis=-1, keepdims=True)
    yn = (y - mean) * jax.lax.rsqrt(var + eps)
    o_ref[...] = (yn * g_ref[...] + b_ref[...]).astype(o_ref.dtype)


# ----------------------------- wrappers ----------------------------------------


def _emb_layernorm(word, ttype, pos, gamma, beta, eps=1e-12):
    B, S, H = word.shape
    kern = functools.partial(emb_layernorm_kernel, eps=eps)
    return pl.pallas_call(
        kern,
        grid=(B,),
        in_specs=[
            pl.BlockSpec((None, S, H), lambda b: (b, 0, 0)),     # word emb rows (per batch)
            pl.BlockSpec((None, S, H), lambda b: (b, 0, 0)),     # token-type emb rows
            pl.BlockSpec((S, H), lambda b: (0, 0)),              # position table (resident)
            pl.BlockSpec((1, H), lambda b: (0, 0)),              # LN gamma
            pl.BlockSpec((1, H), lambda b: (0, 0)),              # LN beta
        ],
        out_specs=pl.BlockSpec((None, S, H), lambda b: (b, 0, 0)),
        out_shape=jax.ShapeDtypeStruct((B, S, H), jnp.bfloat16),
        compiler_params=pltpu.CompilerParams(
            dimension_semantics=("parallel",),
            vmem_limit_bytes=VMEM_LIMIT_BYTES),
    )(word, ttype, pos, gamma.reshape(1, H), beta.reshape(1, H))


def _attention_block(x, wqkv, bqkv, wo, bo, mask_add, gamma, beta,
                     *, num_heads, head_dim, scale, eps=1e-12):
    B, S, H = x.shape
    kern = functools.partial(attention_block_kernel, num_heads=num_heads,
                             head_dim=head_dim, scale=scale, eps=eps)
    return pl.pallas_call(
        kern,
        grid=(B,),
        in_specs=[
            pl.BlockSpec((None, S, H), lambda b: (b, 0, 0)),     # x (per-batch block)
            pl.BlockSpec((H, 3 * H), lambda b: (0, 0)),          # fused QKV weight (resident)
            pl.BlockSpec((1, 3 * H), lambda b: (0, 0)),          # fused QKV bias
            pl.BlockSpec((H, H), lambda b: (0, 0)),              # out-proj weight (resident)
            pl.BlockSpec((1, H), lambda b: (0, 0)),              # out-proj bias
            pl.BlockSpec((None, 1, S), lambda b: (b, 0, 0)),     # additive mask
            pl.BlockSpec((1, H), lambda b: (0, 0)),              # LN gamma
            pl.BlockSpec((1, H), lambda b: (0, 0)),              # LN beta
        ],
        out_specs=pl.BlockSpec((None, S, H), lambda b: (b, 0, 0)),
        out_shape=jax.ShapeDtypeStruct((B, S, H), jnp.bfloat16),
        compiler_params=pltpu.CompilerParams(
            dimension_semantics=("parallel",),
            vmem_limit_bytes=VMEM_LIMIT_BYTES),
    )(x, wqkv, bqkv.reshape(1, 3 * H), wo, bo.reshape(1, H),
      mask_add, gamma.reshape(1, H), beta.reshape(1, H))


def _ffn_block(x2d, w1, b1, w2, b2, gamma, beta, *, eps=1e-12, out_dtype=jnp.bfloat16):
    M, H = x2d.shape
    inter = w1.shape[1]
    tm = _pick_row_tile(M)
    kern = functools.partial(ffn_block_kernel, eps=eps)
    return pl.pallas_call(
        kern,
        grid=(M // tm,),
        in_specs=[
            pl.BlockSpec((tm, H), lambda i: (i, 0)),             # activation row tile
            pl.BlockSpec((H, inter), lambda i: (0, 0)),          # w1 (resident)
            pl.BlockSpec((1, inter), lambda i: (0, 0)),          # b1
            pl.BlockSpec((inter, H), lambda i: (0, 0)),          # w2 (resident)
            pl.BlockSpec((1, H), lambda i: (0, 0)),              # b2
            pl.BlockSpec((1, H), lambda i: (0, 0)),              # LN gamma
            pl.BlockSpec((1, H), lambda i: (0, 0)),              # LN beta
        ],
        out_specs=pl.BlockSpec((tm, H), lambda i: (i, 0)),
        out_shape=jax.ShapeDtypeStruct((M, H), out_dtype),
        compiler_params=pltpu.CompilerParams(
            dimension_semantics=("parallel",),
            vmem_limit_bytes=VMEM_LIMIT_BYTES),
    )(x2d, w1, b1.reshape(1, inter), w2, b2.reshape(1, H),
      gamma.reshape(1, H), beta.reshape(1, H))


# ----------------------------- synthetic BERT ----------------------------------


class BertConfig:
    vocab_size = 100
    max_position = 32
    type_vocab_size = 2
    hidden = 32
    heads = 2
    layers = 2
    intermediate = 64


def init_params(cfg, key):
    std = 0.02
    ks = iter(jax.random.split(key, 4 + cfg.layers * 8))

    def nrm(shape):
        # weights / embedding tables stored in bf16: halves HBM DMA and resident VMEM;
        # all matmuls accumulate in f32 via preferred_element_type.
        return (std * jax.random.normal(next(ks), shape, dtype=jnp.float32)).astype(jnp.bfloat16)

    p = {
        "word_emb": nrm((cfg.vocab_size, cfg.hidden)),
        "pos_emb": nrm((cfg.max_position, cfg.hidden)),
        "type_emb": nrm((cfg.type_vocab_size, cfg.hidden)),
        "emb_ln_g": jnp.ones((cfg.hidden,), jnp.float32),
        "emb_ln_b": jnp.zeros((cfg.hidden,), jnp.float32),
        "layers": [],
    }
    for _ in range(cfg.layers):
        lyr = {
            # fused q|k|v projection
            "wqkv": nrm((cfg.hidden, 3 * cfg.hidden)),
            "bqkv": jnp.zeros((3 * cfg.hidden,), jnp.float32),
            "wo": nrm((cfg.hidden, cfg.hidden)),
            "bo": jnp.zeros((cfg.hidden,), jnp.float32),
            "attn_ln_g": jnp.ones((cfg.hidden,), jnp.float32),
            "attn_ln_b": jnp.zeros((cfg.hidden,), jnp.float32),
            "w1": nrm((cfg.hidden, cfg.intermediate)),
            "b1": jnp.zeros((cfg.intermediate,), jnp.float32),
            "w2": nrm((cfg.intermediate, cfg.hidden)),
            "b2": jnp.zeros((cfg.hidden,), jnp.float32),
            "ffn_ln_g": jnp.ones((cfg.hidden,), jnp.float32),
            "ffn_ln_b": jnp.zeros((cfg.hidden,), jnp.float32),
        }
        p["layers"].append(lyr)
    return p


def bert_embedding_layer_forward(tokens, token_type_ids, attention_mask, params, cfg):
    """Returns features[0] (last_hidden_state) of shape [B, S, H], f32."""
    B, S = tokens.shape
    H, NH = cfg.hidden, cfg.heads
    D = H // NH
    M = B * S

    # --- embeddings (gathers are glue; sum + LayerNorm fused in one tiled kernel) ---
    word = jnp.take(params["word_emb"], tokens, axis=0)                 # [B, S, H] bf16
    ttype = jnp.take(params["type_emb"], token_type_ids, axis=0)        # [B, S, H] bf16
    pos = params["pos_emb"][:S]                                         # [S, H]   bf16 (no tile)
    x = _emb_layernorm(word, ttype, pos, params["emb_ln_g"], params["emb_ln_b"])

    # additive attention mask, HF-style: (1 - mask) * -10000
    mask_add = ((1.0 - attention_mask.astype(jnp.float32)) * -10000.0).reshape(B, 1, S)

    scale = 1.0 / math.sqrt(D)
    n_layers = len(params["layers"])

    for li, lyr in enumerate(params["layers"]):
        # fused: QKV proj + all-heads batched attention + out proj + residual + LayerNorm
        x = _attention_block(x, lyr["wqkv"], lyr["bqkv"], lyr["wo"], lyr["bo"],
                             mask_add, lyr["attn_ln_g"], lyr["attn_ln_b"],
                             num_heads=NH, head_dim=D, scale=scale)
        # fused, row-tiled: FFN matmul + GELU + matmul + residual + LayerNorm
        out_dtype = jnp.float32 if li == n_layers - 1 else jnp.bfloat16
        x = _ffn_block(x.reshape(M, H), lyr["w1"], lyr["b1"], lyr["w2"], lyr["b2"],
                       lyr["ffn_ln_g"], lyr["ffn_ln_b"], out_dtype=out_dtype).reshape(B, S, H)

    return x


# ----------------------------- main ---------------------------------------------


if __name__ == "__main__":
    cfg = BertConfig()
    B, S = 2, 8

    key = jax.random.PRNGKey(0)
    k_tok, k_param = jax.random.split(key)

    tokens = jax.random.randint(k_tok, (B, S), 0, cfg.vocab_size, dtype=jnp.int32)
    token_type_ids = jnp.concatenate(
        [jnp.zeros((B, S // 2), jnp.int32), jnp.ones((B, S // 2), jnp.int32)], axis=1)
    attention_mask = jnp.array(
        [[1, 1, 1, 1, 1, 1, 1, 1],
         [1, 1, 1, 1, 1, 1, 0, 0]], dtype=jnp.int32)                    # 2nd sequence padded

    params = init_params(cfg, k_param)

    out = bert_embedding_layer_forward(tokens, token_type_ids, attention_mask, params, cfg)
    out = jax.block_until_ready(out)

    assert out.shape == (B, S, cfg.hidden)
    assert out.dtype == jnp.float32
    assert bool(jnp.all(jnp.isfinite(out)))
    print("KERNEL_OK")
</pallas_src>

<mosaic_0001>
module attributes {stable_mosaic.version = 11 : i64} {
  func.func @emb_layernorm_kernel(%arg0: i32, %arg1: memref<1x8x32xbf16, #tpu.memory_space<vmem>>, %arg2: memref<1x8x32xbf16, #tpu.memory_space<vmem>>, %arg3: memref<8x32xbf16, #tpu.memory_space<vmem>>, %arg4: memref<1x32xf32, #tpu.memory_space<vmem>>, %arg5: memref<1x32xf32, #tpu.memory_space<vmem>>, %arg6: memref<1x8x32xbf16, #tpu.memory_space<vmem>>) attributes {dimension_semantics = [#tpu.dimension_semantics<parallel>], iteration_bounds = array<i64: 2>, scalar_prefetch = 0 : i64, scratch_operands = 0 : i64, tpu.core_type = #tpu.core_type<tc>, window_params = [{transform_indices = @transform_0, window_bounds = array<i64: 1, 8, 32>}, {transform_indices = @transform_1, window_bounds = array<i64: 1, 8, 32>}, {pipeline_mode = #tpu.pipeline_mode<synchronous>, transform_indices = @transform_2, window_bounds = array<i64: 8, 32>}, {pipeline_mode = #tpu.pipeline_mode<synchronous>, transform_indices = @transform_3, window_bounds = array<i64: 1, 32>}, {pipeline_mode = #tpu.pipeline_mode<synchronous>, transform_indices = @transform_4, window_bounds = array<i64: 1, 32>}, {transform_indices = @transform_5, window_bounds = array<i64: 1, 8, 32>}]} {
    %c0 = arith.constant 0 : index
    %c0_0 = arith.constant 0 : index
    %c0_1 = arith.constant 0 : index
    %0 = vector.load %arg1[%c0, %c0_0, %c0_1] : memref<1x8x32xbf16, #tpu.memory_space<vmem>>, vector<1x8x32xbf16>
    %1 = vector.shape_cast %0 : vector<1x8x32xbf16> to vector<8x32xbf16>
    %2 = arith.extf %1 : vector<8x32xbf16> to vector<8x32xf32>
    %c0_2 = arith.constant 0 : index
    %c0_3 = arith.constant 0 : index
    %c0_4 = arith.constant 0 : index
    %3 = vector.load %arg2[%c0_2, %c0_3, %c0_4] : memref<1x8x32xbf16, #tpu.memory_space<vmem>>, vector<1x8x32xbf16>
    %4 = vector.shape_cast %3 : vector<1x8x32xbf16> to vector<8x32xbf16>
    %5 = arith.extf %4 : vector<8x32xbf16> to vector<8x32xf32>
    %6 = arith.addf %2, %5 : vector<8x32xf32>
    %c0_5 = arith.constant 0 : index
    %c0_6 = arith.constant 0 : index
    %7 = vector.load %arg3[%c0_5, %c0_6] : memref<8x32xbf16, #tpu.memory_space<vmem>>, vector<8x32xbf16>
    %8 = arith.extf %7 : vector<8x32xbf16> to vector<8x32xf32>
    %9 = arith.addf %6, %8 : vector<8x32xf32>
    %cst = arith.constant dense<0.000000e+00> : vector<8xf32>
    %10 = vector.multi_reduction <add>, %9, %cst [1] : vector<8x32xf32> to vector<8xf32>
    %11 = vector.shape_cast %10 : vector<8xf32> to vector<8x1xf32>
    %cst_7 = arith.constant 3.200000e+01 : f32
    %12 = vector.broadcast %cst_7 : f32 to vector<8x1xf32>
    %13 = arith.divf %11, %12 : vector<8x1xf32>
    %14 = vector.broadcast %13 : vector<8x1xf32> to vector<8x32xf32>
    %15 = arith.subf %9, %14 : vector<8x32xf32>
    %16 = vector.broadcast %13 : vector<8x1xf32> to vector<8x32xf32>
    %17 = arith.subf %9, %16 : vector<8x32xf32>
    %18 = arith.mulf %15, %17 : vector<8x32xf32>
    %cst_8 = arith.constant dense<0.000000e+00> : vector<8xf32>
    %19 = vector.multi_reduction <add>, %18, %cst_8 [1] : vector<8x32xf32> to vector<8xf32>
    %20 = vector.shape_cast %19 : vector<8xf32> to vector<8x1xf32>
    %cst_9 = arith.constant 3.200000e+01 : f32
    %21 = vector.broadcast %cst_9 : f32 to vector<8x1xf32>
    %22 = arith.divf %20, %21 : vector<8x1xf32>
    %23 = vector.broadcast %13 : vector<8x1xf32> to vector<8x32xf32>
    %24 = arith.subf %9, %23 : vector<8x32xf32>
    %cst_10 = arith.constant 9.99999996E-13 : f32
    %25 = vector.broadcast %cst_10 : f32 to vector<8x1xf32>
    %26 = arith.addf %22, %25 : vector<8x1xf32>
    %27 = math.rsqrt %26 : vector<8x1xf32>
    %28 = vector.broadcast %27 : vector<8x1xf32> to vector<8x32xf32>
    %29 = arith.mulf %24, %28 : vector<8x32xf32>
    %c0_11 = arith.constant 0 : index
    %c0_12 = arith.constant 0 : index
    %30 = vector.load %arg4[%c0_11, %c0_12] : memref<1x32xf32, #tpu.memory_space<vmem>>, vector<1x32xf32>
    %31 = vector.broadcast %30 : vector<1x32xf32> to vector<8x32xf32>
    %32 = arith.mulf %29, %31 : vector<8x32xf32>
    %c0_13 = arith.constant 0 : index
    %c0_14 = arith.constant 0 : index
    %33 = vector.load %arg5[%c0_13, %c0_14] : memref<1x32xf32, #tpu.memory_space<vmem>>, vector<1x32xf32>
    %34 = vector.broadcast %33 : vector<1x32xf32> to vector<8x32xf32>
    %35 = arith.addf %32, %34 : vector<8x32xf32>
    %36 = arith.truncf %35 : vector<8x32xf32> to vector<8x32xbf16>
    %c0_15 = arith.constant 0 : index
    %c0_16 = arith.constant 0 : index
    %c0_17 = arith.constant 0 : index
    %37 = vector.load %arg6[%c0_15, %c0_16, %c0_17] : memref<1x8x32xbf16, #tpu.memory_space<vmem>>, vector<1x8x32xbf16>
    %38 = vector.shape_cast %37 : vector<1x8x32xbf16> to vector<8x32xbf16>
    %39 = vector.shape_cast %36 : vector<8x32xbf16> to vector<1x8x32xbf16>
    tpu.vector_store %arg6[%c0_15, %c0_16, %c0_17], %39 {strides = array<i32>} : memref<1x8x32xbf16, #tpu.memory_space<vmem>>, vector<1x8x32xbf16>,
    return
  }
  func.func @transform_0(%arg0: i32) -> (i32, i32, i32) {
    %c0_i32 = arith.constant 0 : i32
    %c0_i32_0 = arith.constant 0 : i32
    %c0_i32_1 = arith.constant 0 : i32
    return %arg0, %c0_i32, %c0_i32_0 : i32, i32, i32
  }
  func.func @transform_1(%arg0: i32) -> (i32, i32, i32) {
    %c0_i32 = arith.constant 0 : i32
    %c0_i32_0 = arith.constant 0 : i32
    %c0_i32_1 = arith.constant 0 : i32
    return %arg0, %c0_i32, %c0_i32_0 : i32, i32, i32
  }
  func.func @transform_2(%arg0: i32) -> (i32, i32) {
    %c0_i32 = arith.constant 0 : i32
    %c0_i32_0 = arith.constant 0 : i32
    %c0_i32_1 = arith.constant 0 : i32
    return %c0_i32, %c0_i32_0 : i32, i32
  }
  func.func @transform_3(%arg0: i32) -> (i32, i32) {
    %c0_i32 = arith.constant 0 : i32
    %c0_i32_0 = arith.constant 0 : i32
    %c0_i32_1 = arith.constant 0 : i32
    return %c0_i32, %c0_i32_0 : i32, i32
  }
  func.func @transform_4(%arg0: i32) -> (i32, i32) {
    %c0_i32 = arith.constant 0 : i32
    %c0_i32_0 = arith.constant 0 : i32
    %c0_i32_1 = arith.constant 0 : i32
    return %c0_i32, %c0_i32_0 : i32, i32
  }
  func.func @transform_5(%arg0: i32) -> (i32, i32, i32) {
    %c0_i32 = arith.constant 0 : i32
    %c0_i32_0 = arith.constant 0 : i32
    %c0_i32_1 = arith.constant 0 : i32
    return %arg0, %c0_i32, %c0_i32_0 : i32, i32, i32
  }
}

</mosaic_0001>

<bundles_post_ra>
// kernel: tpu_custom_call.1
= control target key start
LH: loop header
LB: loop body
LE: loop exit
PB: predicated region body
PF: predicated region fallthrough
CT: control target
= control target key end

     0   :  { %s1150_s0 = inlined_call_operand.hbm [shape: bf16[2,8,32], index: 0, kind: input, shape index: {}]   ;;  %s1151_s1 = inlined_call_operand.hbm [shape: bf16[2,8,32], index: 1, kind: input, shape index: {}]   ;;  %s1152_s2 = inlined_call_operand.hbm [shape: bf16[8,32], index: 2, kind: input, shape index: {}]   ;;  %s1153_s3 = inlined_call_operand.hbm [shape: f32[1,32], index: 3, kind: input, shape index: {}]   ;;  %s1154_s4 = inlined_call_operand.hbm [shape: f32[1,32], index: 4, kind: input, shape index: {}]   ;;  %s1155_s5 = inlined_call_operand.hbm [shape: bf16[2,8,32], index: 5, kind: output, shape index: {}]  }
   0x1   :  { %1160 = sst [smem:[#allocation17_spill]] %s1152_s2 }
   0x2   :  { %1161 = sst [smem:[#allocation18_spill]] %s1153_s3 }
   0x3   :  { %10 = vsyncpa [#allocation3], 0 }
   0x4   :  { %12 = vsyncpa [#allocation3 + $0x1], 0 }
   0x5   :  { %13 = vsyncpa [#allocation6], 0 }
   0x6   :  { %15 = vsyncpa [#allocation6 + $0x1], 0 }
   0x7   :  { %16 = vsyncpa [#allocation9], 0 }
   0x8   :  { %17 = vsyncpa [#allocation4], 0 }
   0x9   :  { %19 = vsyncpa [#allocation4 + $0x1], 0  ;;  %s858_s18 = smov 0   ;;  %s860_s19 = smov 0  }
   0xa   :  { %s862_s20 = smov 0   ;;  %s864_s21 = smov 0  }
   0xb LB: > { %s879_s22 = sadd.s32 4294967295, %s820_s21   ;;  %s491_s23 = sadd.s32 4294967294, %s820_s21   ;;  %s820_s21 = sphi %s864_s21, %s1184_s21   ;;  %s816_s20 = sphi %s862_s20, %s1183_s20   ;;  %s812_s19 = sphi %s860_s19, %s1182_s19   ;;  %s808_s18 = sphi %s858_s18, %s1181_s18  }
   0xc   : > { %p45_p0 = scmp.ne.s32.totalorder %s812_s19, %s808_s18  ;;  %p1156_p1 = scmp.eq.s32.totalorder %s879_s22, 0 }
   0xd   : > { %p164_p3 = scmp.eq.s32.totalorder %s491_s23, 1  ;;  %p492_p5 = scmp.ge.s32.totalorder %s820_s21, 1 }
   0xe   : > { %p888_p4 = por %p1156_p1, %p45_p0  ;;  %p171_p7 = scmp.lt.s32.totalorder %s820_s21, 3 }
   0xf   : > { %p893_p6 = por %p164_p3, %p45_p0  ;;  %s822_s27 = smov [#allocation7]  }
  0x10   : > { %s1162_s24 = scalar_select %p888_p4, 1, 0 }
  0x11   : > { %s1163_s25 = scalar_select %p893_p6, 1, 0 }
  0x12   : > { %p898_p8 = pnand %p492_p5, %p171_p7  ;;  %s184_s28 = sshll.u32 %s822_s27, 4  ;;  %s185_s28 = int_to_ptr.vmem [resolvable:$true] %s184_s28 }
  0x13   : > { %s823_s29 = smov [#allocation8]   ;;  %s824_s7 = smov [#allocation10]  }
  0x14   : > { %s1164_s26 = scalar_select %p898_p8, 1, 0 }
  0x15   : > { %p532_p10 = pneg %p898_p8  ;;  %s195_s30 = sshll.u32 %s823_s29, 4  ;;  %s911_s30 = int_to_ptr.vmem [resolvable:$true] %s195_s30 }
  0x16   : > { %s206_s8 = sshll.u32 %s824_s7, 4  ;;  %s1166_s2 = sld [smem:[#allocation17_spill]]  ;;  %s913_s8 = int_to_ptr.vmem [resolvable:$true] %s206_s8 }
  0x17   : > { %p907_p11 = pnand %p532_p10, %p1156_p1 }
  0x19   : > { %p923_p13 = pneg %p907_p11 }
  0x1c   : > { %s598_s11 = scalar_lea.hbm %s1166_s2, 64 }
  0x1d   : > { %p599_p12 = scmp.ne.s32.totalorder %s1166_s2, %s598_s11  ;;  %p605_p5 = scmp.lt.u32.totalorder %s598_s11, %s1166_s2 }
  0x1f   : > { %p601_p0 = pnand %p923_p13, %p599_p12 }
  0x21   : > { %p602_p3 = pneg %p601_p0 }
  0x23   : > { %p607_p7 = pnand %p605_p5, %p602_p3 }
  0x25   : > { %610 = shalt.err (!%p607_p7)
}
  0x26   : > { %s611_s17 = scalar_lea.vmem %s185_s28, 64  ;;  %p619_p2 = scmp.lt.s32.totalorder %s185_s28, %s185_s28 }
  0x27   : > { %p612_p10 = scmp.ne.s32.totalorder %s185_s28, %s611_s17  ;;  %p620_p6 = scmp.lt.s32.totalorder %s611_s17, %s611_s17 }
  0x29   : > { %p614_p9 = pnand %p612_p10, %p923_p13  ;;  %p621_p4 = por %p620_p6, %p619_p2 }
  0x2b   : > { %p615_p1 = pneg %p614_p9 }
  0x2d   : > { %p622_p8 = pnand %p621_p4, %p615_p1 }
  0x2f   : > { %625 = shalt.err (!%p622_p8)
}
  0x30   : > { %535 = dma.hbm_to_vmem [thread:$0]  (!%p907_p11), %s1166_s2, 64, %s185_s28, [#allocation6]  }
  0x31   : > { %s1168_s3 = sld [smem:[#allocation18_spill]] }
  0x37   : > { %s626_s9 = scalar_lea.hbm %s1168_s3, 16 }
  0x38   : > { %p627_p9 = scmp.ne.s32.totalorder %s1168_s3, %s626_s9  ;;  %p633_p1 = scmp.lt.u32.totalorder %s626_s9, %s1168_s3 }
  0x3a   : > { %p629_p12 = pnand %p627_p9, %p923_p13 }
  0x3c   : > { %p630_p2 = pneg %p629_p12 }
  0x3e   : > { %p635_p4 = pnand %p633_p1, %p630_p2 }
  0x40   : > { %638 = shalt.err (!%p635_p4)
}
  0x41   : > { %s639_s28 = scalar_lea.vmem %s911_s30, 16  ;;  %s646_s15 = scalar_lea.vmem %s911_s30, 32 }
  0x42   : > { %p640_p6 = scmp.ne.s32.totalorder %s911_s30, %s639_s28  ;;  %p647_p3 = scmp.lt.s32.totalorder %s911_s30, %s911_s30 }
  0x43   : > { %p648_p5 = scmp.lt.s32.totalorder %s646_s15, %s639_s28 }
  0x44   : > { %p642_p8 = pnand %p640_p6, %p923_p13 }
  0x45   : > { %p649_p7 = por %p648_p5, %p647_p3 }
  0x46   : > { %p643_p0 = pneg %p642_p8 }
  0x48   : > { %p650_p10 = pnand %p649_p7, %p643_p0 }
  0x4a   : > { %653 = shalt.err (!%p650_p10)
}
  0x4b   : > { %538 = dma.hbm_to_vmem [thread:$0]  (!%p907_p11), %s1168_s3, 16, %s911_s30, [#allocation9]  }
  0x4c   : > { %s654_s29 = scalar_lea.hbm %s1154_s4, 16 }
  0x4d   : > { %p655_p9 = scmp.ne.s32.totalorder %s1154_s4, %s654_s29  ;;  %p661_p1 = scmp.lt.u32.totalorder %s654_s29, %s1154_s4 }
  0x4f   : > { %p657_p12 = pnand %p655_p9, %p923_p13 }
  0x51   : > { %p658_p2 = pneg %p657_p12 }
  0x53   : > { %p663_p4 = pnand %p661_p1, %p658_p2 }
  0x55   : > { %666 = shalt.err (!%p663_p4)
}
  0x56   : > { %s667_s30 = scalar_lea.vmem %s913_s8, 16  ;;  %s674_s12 = scalar_lea.vmem %s913_s8, 32 }
  0x57   : > { %p668_p6 = scmp.ne.s32.totalorder %s913_s8, %s667_s30  ;;  %p675_p3 = scmp.lt.s32.totalorder %s913_s8, %s913_s8 }
  0x58   : > { %p676_p5 = scmp.lt.s32.totalorder %s674_s12, %s667_s30 }
  0x59   : > { %p670_p8 = pnand %p668_p6, %p923_p13 }
  0x5a   : > { %p677_p7 = por %p676_p5, %p675_p3 }
  0x5b   : > { %p671_p0 = pneg %p670_p8 }
  0x5d   : > { %p678_p10 = pnand %p677_p7, %p671_p0 }
  0x5f   : > { %681 = shalt.err (!%p678_p10)
}
  0x60   : > { %541 = dma.hbm_to_vmem [thread:$0]  (!%p907_p11), %s1154_s4, 16, %s913_s8, [#allocation9]  }
  0x61   : > { %s988_s14 = sadd.s32 1, %s820_s21   ;;  %s32_s15 = sadd.s32 1, %s816_s20 }
  0x62   : > { %s29_s6 = ssub.s32 %s820_s21, %s988_s14  ;;  %p39_p9 = scmp.ne.s32.totalorder %s816_s20, %s812_s19 }
  0x63   : > { %p30_p13 = scmp.eq.s32.totalorder %s29_s6, 0  ;;  %p40_p12 = scmp.eq.s32.totalorder %s820_s21, 0 }
  0x64   : > { %p556_p2 = scmp.lt.s32.totalorder %s820_s21, 2  ;;  %p1169_p4 = scmp.eq.s32.totalorder %s879_s22, 1 }
  0x65   : > { %s998_s16 = scalar_select %p30_p13, %s816_s20, %s32_s15  }
  0x66   : > { %p41_p1 = por %p40_p12, %p39_p9  ;;  %p1002_p6 = por %p1169_p4, %p39_p9 }
  0x67   : > { %s217_s23 = sand.u32 1, %s816_s20   ;;  %s498_s27 = sshll.u32 %s820_s21, 6 }
  0x68   : > { %s1170_s17 = scalar_select %p1002_p6, 1, 0 }
  0x69   : > { %s1008_s8 = sshll.u32 %s217_s23, 2  ;;  %s1013_s9 = scalar_lea.hbm %s1150_s0, %s498_s27 }
  0x6a   : > { %s221_s10 = scalar_lea.vmem [#allocation2], %s1008_s8  ;;  %p1016_p11 = pnand %p556_p2, %p41_p1 }
  0x6b   : > { %s228_s11 = sshll.u32 %s221_s10, 4  ;;  %s1025_s28 = scalar_lea.hbm %s1151_s1, %s498_s27  ;;  %s1020_s11 = int_to_ptr.vmem [resolvable:$true] %s228_s11 }
  0x6c   : > { %s218_s6 = scalar_lea.sflag [#allocation3], %s217_s23  ;;  %s682_s15 = scalar_lea.hbm %s1013_s9, 64 }
  0x6d   : > { %p683_p8 = scmp.ne.s32.totalorder %s1013_s9, %s682_s15  ;;  %p684_p0 = pneg %p1016_p11 }
  0x6e   : > { %s687_s10 = scalar_lea.hbm %s1150_s0, 128  ;;  %p688_p7 = scmp.lt.u32.totalorder %s1013_s9, %s1150_s0 }
  0x6f   : > { %p685_p3 = pnand %p684_p0, %p683_p8  ;;  %p689_p10 = scmp.lt.u32.totalorder %s687_s10, %s682_s15 }
  0x70   : > { %p691_p9 = scmp.lt.u32.totalorder %s682_s15, %s1013_s9 }
  0x71   : > { %p686_p5 = pneg %p685_p3  ;;  %p690_p13 = por %p689_p10, %p688_p7 }
  0x73   : > { %p692_p12 = por %p691_p9, %p690_p13 }
  0x75   : > { %p693_p2 = pnand %p692_p12, %p686_p5 }
  0x77   : > { %696 = shalt.err (!%p693_p2)
}
  0x78   : > { %s697_s23 = scalar_lea.vmem %s1020_s11, 64  ;;  %s825_s27 = smov [#allocation2]  }
  0x79   : > { %p698_p1 = scmp.ne.s32.totalorder %s1020_s11, %s697_s23  ;;  %s702_s12 = sshll.u32 %s825_s27, 4  ;;  %s703_s12 = int_to_ptr.vmem [resolvable:$false] %s702_s12 }
  0x7a   : > { %s704_s2 = scalar_lea.vmem %s703_s12, 128  ;;  %p705_p3 = scmp.lt.s32.totalorder %s1020_s11, %s703_s12 }
  0x7b   : > { %p700_p4 = pnand %p698_p1, %p684_p0  ;;  %p706_p7 = scmp.lt.s32.totalorder %s704_s2, %s697_s23 }
  0x7d   : > { %p701_p8 = pneg %p700_p4  ;;  %p707_p10 = por %p706_p7, %p705_p3 }
  0x7f   : > { %p708_p13 = pnand %p707_p10, %p701_p8 }
  0x81   : > { %711 = shalt.err (!%p708_p13)
}
  0x82   : > { %545 = dma.hbm_to_vmem [thread:$0]  (!%p1016_p11), %s1013_s9, 64, %s1020_s11, %s218_s6  }
  0x83   : > { %s235_s3 = sand.u32 1, %s820_s21   ;;  %s239_s13 = scalar_lea.vmem [#allocation5], %s1008_s8 }
  0x84   : > { %s246_s15 = sshll.u32 %s239_s13, 4  ;;  %s236_s29 = scalar_lea.sflag [#allocation6], %s235_s3  ;;  %s247_s15 = int_to_ptr.vmem [resolvable:$true] %s246_s15 }
  0x85   : > { %s712_s7 = scalar_lea.hbm %s1025_s28, 64  ;;  %s717_s27 = scalar_lea.hbm %s1151_s1, 128 }
  0x86   : > { %p713_p5 = scmp.ne.s32.totalorder %s1025_s28, %s712_s7  ;;  %p718_p2 = scmp.lt.u32.totalorder %s1025_s28, %s1151_s1 }
  0x87   : > { %p719_p1 = scmp.lt.u32.totalorder %s717_s27, %s712_s7  ;;  %p721_p8 = scmp.lt.u32.totalorder %s712_s7, %s1025_s28 }
  0x88   : > { %p715_p9 = pnand %p713_p5, %p684_p0 }
  0x89   : > { %p720_p4 = por %p719_p1, %p718_p2 }
  0x8a   : > { %p716_p12 = pneg %p715_p9 }
  0x8b   : > { %p722_p3 = por %p721_p8, %p720_p4 }
  0x8d   : > { %p723_p7 = pnand %p722_p3, %p716_p12 }
  0x8f   : > { %726 = shalt.err (!%p723_p7)
}
  0x90   : > { %s727_s8 = scalar_lea.vmem %s247_s15, 64  ;;  %s826_s9 = smov [#allocation5]  }
  0x91   : > { %p728_p10 = scmp.ne.s32.totalorder %s247_s15, %s727_s8  ;;  %s732_s11 = sshll.u32 %s826_s9, 4  ;;  %s733_s11 = int_to_ptr.vmem [resolvable:$false] %s732_s11 }
  0x92   : > { %s734_s6 = scalar_lea.vmem %s733_s11, 128  ;;  %p735_p9 = scmp.lt.s32.totalorder %s247_s15, %s733_s11 }
  0x93   : > { %p730_p13 = pnand %p728_p10, %p684_p0  ;;  %p736_p6 = scmp.lt.s32.totalorder %s734_s6, %s727_s8 }
  0x95   : > { %p731_p5 = pneg %p730_p13  ;;  %p737_p1 = por %p736_p6, %p735_p9 }
  0x97   : > { %p738_p2 = pnand %p737_p1, %p731_p5 }
  0x99   : > { %741 = shalt.err (!%p738_p2)
}
  0x9a   : > { %548 = dma.hbm_to_vmem [thread:$0]  (!%p1016_p11), %s1025_s28, 64, %s247_s15, %s236_s29  }
  0x9b   : > { %p1172_p12 = scmp.ne.s32.totalorder %s1164_s26, 0 }
  0x9c   : > { %s1076_s3 = sand.u32 (!%p1172_p12), 1, %s812_s19   ;;  %p1173_p6 = scmp.ne.s32.totalorder (!%p1172_p12), %s1162_s24, 0 }
  0x9d   : > { %255 = sbr.rel (%p1172_p12) target bundleno = 511 (0x1ff), region = 40  ;;  %s1079_s13 = sshll.u32 (!%p1172_p12), %s1076_s3, 2 }
  0x9e   : > { %s258_s7 = scalar_lea.sflag (!%p1172_p12), [#allocation3], %s1076_s3  ;;  %s261_s10 = scalar_lea.vmem (!%p1172_p12), [#allocation2], %s1079_s13 }
  0xa4   : > { %787 = dma.done.wait (%p1173_p6), %s258_s7, 64  }
  0xa5   : > { %789 = vsyncadd (%p1173_p6), %s258_s7, 4294967232  ;;  %s266_s26 = sand.u32 1, %s879_s22   ;;  %s270_s28 = scalar_lea.vmem [#allocation5], %s1079_s13 }
  0xa6   : > { %s267_s30 = scalar_lea.sflag [#allocation6], %s266_s26 }
  0xa7   : > { %791 = dma.done.wait (%p1173_p6), %s267_s30, 64  }
  0xa8   : > { %793 = vsyncadd (%p1173_p6), %s267_s30, 4294967232  ;;  %p1174_p11 = scmp.eq.s32.totalorder %s879_s22, 0 }
  0xaa   : > { %795 = dma.done.wait (%p1174_p11), [#allocation6], 64   ;;  %p1175_p0 = pmov %p1174_p11 }
  0xac   : > { %797 = vsyncadd (%p1175_p0), [#allocation6], 4294967232  ;;  %p1176_p4 = pmov %p1175_p0 }
  0xad   : > { %p1177_p8 = pmov %p1175_p0 }
  0xae   : > { %799 = dma.done.wait (%p1176_p4), [#allocation9], 32  }
  0xaf   : > { %801 = vsyncadd (%p1177_p8), [#allocation9], 4294967264  ;;  %v314_v0 = vld [vmem:[%s261_s10] sm:$0xf]  ;;  %v316_v1 = vld [vmem:[%s270_s28] sm:$0xf] }
  0xb0   : > { %v319_v2 = vld [vmem:[#allocation7] sm:$0xf]  ;;  %v315_v3 = vunpack.c.l.bf16 %v314_v0  ;;  %v317_v4 = vunpack.c.l.bf16 %v316_v1  ;;  %vm322_vm0 = vcmask 261120   ;;  %v508_v18 = vld [vmem:[#allocation8] ss:$0 sm:$0xff]  ;;  %s511_s24 = sshll.u32 %s879_s22, 6 }
  0xb1   : > { %v320_v5 = vunpack.c.l.bf16 %v319_v2  ;;  %v509_v20 = vld [vmem:[#allocation10] ss:$0 sm:$0xff]  ;;  %s313_s15 = scalar_lea.vmem [#allocation11], %s1079_s13  ;;  %vm354_vm1 = vcmask 257024   ;;  %s1106_s12 = scalar_lea.hbm %s1155_s5, %s511_s24 }
  0xb2   : > { %v318_v6 = vadd.f32 %v317_v4, %v315_v3  ;;  %s370_s29 = sshll.u32 %s313_s15, 4  ;;  %s357_s2 = scalar_lea.sflag [#allocation4], %s1076_s3  ;;  %s1108_s29 = int_to_ptr.vmem [resolvable:$true] %s370_s29 }
  0xb3   : > { %s742_s8 = scalar_lea.vmem %s1108_s29, 64  ;;  %p1178_p7 = scmp.ne.s32.totalorder %s1170_s17, 0 }
  0xb4   : > { %v321_v7 = vadd.f32 %v320_v5, %v318_v6  ;;  %p743_p3 = scmp.ne.s32.totalorder %s1108_s29, %s742_s8  ;;  %s827_s22 = smov [#allocation11]  }
  0xb5   : > { %s746_s9 = sshll.u32 %s827_s22, 4  ;;  %s747_s9 = int_to_ptr.vmem [resolvable:$false] %s746_s9 }
  0xb6   : > { %v323_v8 = vsel %vm322_vm0, %v321_v7, 0.0  ;;  %p744_p10 = pnand %p743_p3, %p1178_p7  ;;  %s748_s11 = scalar_lea.vmem %s747_s9, 128 }
  0xb7   : > { %324 = vadd.xlane.f32.xlu0 %v323_v8  ;;  %p749_p5 = scmp.lt.s32.totalorder %s1108_s29, %s747_s9  ;;  %p750_p9 = scmp.lt.s32.totalorder %s748_s11, %s742_s8 }
  0xb8   : > { %p745_p13 = pneg %p744_p10 }
  0xb9   : > { %p751_p1 = por %p750_p9, %p749_p5 }
  0xbb   : > { %p752_p2 = pnand %p751_p1, %p745_p13 }
 0x144   : > { %v325_v9 = vpop.xlane.xlu0 %324 }
 0x145   : > { %v327_v10 = vmul.f32 0.03125, %v325_v9 }
 0x147   : > { %v328_v11 = vsub.f32 %v321_v7, %v327_v10 }
 0x149   : > { %v329_v12 = vmul.f32 %v328_v11, %v328_v11 }
 0x14b   : > { %v330_v13 = vsel %vm322_vm0, %v329_v12, 0.0 }
 0x14c   : > { %331 = vadd.xlane.f32.xlu0 %v330_v13 }
 0x1d9   : > { %v332_v14 = vpop.xlane.xlu0 %331 }
 0x1da   : > { %v333_v15 = vmul.f32 0.03125, %v332_v14 }
 0x1dc   : > { %v334_v16 = vadd.f32 1e-12, %v333_v15 }
 0x1de   : > { %596 = vrsqrt.f32 %v334_v16 }
 0x1e8   : > { %v597_v17 = vpop.eup %596 }
 0x1e9   : > { %v336_v19 = vmul.f32 %v597_v17, %v328_v11 }
 0x1eb   : > { %v344_v21 = vmul.f32 %v508_v18, %v336_v19 }
 0x1ed   : > { %v352_v22 = vadd.f32 %v509_v20, %v344_v21 }
 0x1ef   : > { %v353_v23 = vpack.c.bf16 %v352_v22, %v352_v22 }
 0x1f1   : > { %355 = vst.msk [vmem:[%s313_s15] sm:$0xf] %vm354_vm1, %v353_v23 }
 0x1f2   : > { %755 = shalt.err (!%p752_p2)
}
 0x1f3   : > { %s756_s6 = scalar_lea.hbm %s1106_s12, 64  ;;  %s760_s7 = scalar_lea.hbm %s1155_s5, 128 }
 0x1f4   : > { %p757_p12 = scmp.ne.s32.totalorder %s1106_s12, %s756_s6  ;;  %p761_p0 = scmp.lt.u32.totalorder %s1106_s12, %s1155_s5 }
 0x1f5   : > { %p762_p4 = scmp.lt.u32.totalorder %s760_s7, %s756_s6  ;;  %p764_p3 = scmp.lt.u32.totalorder %s756_s6, %s1106_s12 }
 0x1f6   : > { %p758_p6 = pnand %p757_p12, %p1178_p7 }
 0x1f7   : > { %p763_p8 = por %p762_p4, %p761_p0 }
 0x1f8   : > { %p759_p11 = pneg %p758_p6 }
 0x1f9   : > { %p765_p10 = por %p764_p3, %p763_p8 }
 0x1fb   : > { %p766_p13 = pnand %p765_p10, %p759_p11 }
 0x1fd   : > { %769 = shalt.err (!%p766_p13)
}
 0x1fe   : > { %530 = dma.vmem_to_hbm [thread:$0]  (%p1178_p7), %s1108_s29, 64, %s1106_s12, %s357_s2  }
 0x1ff PF: > { %s382_s30 = sand.u32 1, %s808_s18   ;;  %p1179_p5 = scmp.ne.s32.totalorder %s1163_s25, 0 }
 0x200   : > { %p1180_p9 = scmp.ge.s32.totalorder %s820_s21, 2  ;;  %s383_s28 = scalar_lea.sflag [#allocation4], %s382_s30 }
 0x202   : > { %p550_p1 = pnand %p1180_p9, %p1179_p5 }
 0x204   : > { %803 = dma.done.wait (!%p550_p1), %s383_s28, 64  }
 0x205   : > { %805 = vsyncadd (!%p550_p1), %s383_s28, 4294967232  ;;  %p22_p2 = scmp.ge.s32.totalorder %s988_s14, 4   ;;  %s1181_s18 = smov %s812_s19 }
 0x206   : > { %s1182_s19 = smov %s816_s20  ;;  %s1183_s20 = smov %s998_s16 }
 0x207   : > { %s1184_s21 = smov %s988_s14  ;;  %24 = sbr.rel (!%p22_p2) target bundleno = 11 (0xb), region = 110 }
 0x20e   :  { %388 = vsyncpa [#allocation3], 1 }
 0x20f   :  { %390 = vsyncpa [#allocation3 + $0x1], 1 }
 0x210   :  { %391 = vsyncpa [#allocation6], 1 }
 0x211   :  { %393 = vsyncpa [#allocation6 + $0x1], 1 }
 0x212   :  { %394 = vsyncpa [#allocation9], 1 }
 0x213   :  { %395 = vsyncpa [#allocation4], 1 }
 0x214   :  { %397 = vsyncpa [#allocation4 + $0x1], 1 }

</bundles_post_ra>
